<compile_context>
chip_gen: v7x
topology: tpu7x:2x2x1
jax: 0.10.0
libtpu: 0.0.40
codegen_flags: <defaults>
</compile_context>

<pallas_src>
import math

import jax
import jax.numpy as jnp
from jax import lax
from jax.experimental import pallas as pl
from jax.experimental.pallas import tpu as pltpu


def _vmem_limit_bytes() -> int:
    """~3/4 of physical VMEM: ~48 MiB on v7x (64 MiB), ~96 MiB on v5e/v6e (128 MiB)."""
    try:
        cap = int(pltpu.get_tpu_info().vmem_capacity_bytes)
        return max(cap * 3 // 4, 32 * 1024 * 1024)
    except Exception:
        return 48 * 1024 * 1024


def _largest_tile(n: int, cap: int) -> int:
    for t in (512, 256, 128, 64, 32, 16, 8):
        if t <= cap and n % t == 0:
            return t
    return n


def _choose_tiles(S: int, vmem_limit: int):
    """VMEM-budget-aware q / kv tile sizes.

    The softmax chain keeps ~12 live f32 (TQ, TK) temporaries; keep those within
    ~1/4 of the VMEM limit (rest goes to streamed blocks / scratch / spill headroom).
    Shrink TQ first so the streamed KV block stays large; keep the MXU M-dim >= 128.
    """
    budget = vmem_limit // 4
    tq_cap, tk_cap = 512, 512
    while tq_cap > 128 and 12 * 4 * tq_cap * tk_cap > budget:
        tq_cap //= 2
    while tk_cap > 128 and 12 * 4 * tq_cap * tk_cap > budget:
        tk_cap //= 2
    return _largest_tile(S, tq_cap), _largest_tile(S, tk_cap)


def _make_kernel(approx_recip: bool):
    def kernel(qa_ref, qb_ref, kp_ref, vr_ref, vi_ref, o_ref,
               m_sc, l_sc, accr_sc, acci_sc):
        kv = pl.program_id(2)

        @pl.when(kv == 0)
        def _init():
            m_sc[...] = jnp.full_like(m_sc, -jnp.inf)
            l_sc[...] = jnp.zeros_like(l_sc)
            accr_sc[...] = jnp.zeros_like(accr_sc)
            acci_sc[...] = jnp.zeros_like(acci_sc)

        qa = qa_ref[0]              # [TQ, 2D] = [qr | -qi] / temperature
        qb = qb_ref[0]              # [TQ, 2D] = [qi |  qr] / temperature
        kp = kp_ref[0]              # [TK, 2D] = [kr |  ki]

        # Complex QK^T: two MXU matmuls with 2D-deep contraction, no transposes.
        #   ar = qr@kr^T - qi@ki^T ,   ai = qi@kr^T + qr@ki^T
        dn = (((1,), (1,)), ((), ()))
        ar = lax.dot_general(qa, kp, dn, preferred_element_type=jnp.float32)  # [TQ, TK]
        ai = lax.dot_general(qb, kp, dn, preferred_element_type=jnp.float32)  # [TQ, TK]

        # Online CVSoftMax: softmax over |score|, phase preserved.
        sq = ar * ar + ai * ai
        nonzero = sq > 0.0
        inv_mag = lax.rsqrt(jnp.where(nonzero, sq, 1.0))
        mag = sq * inv_mag                                   # |score| (exactly 0 when sq == 0)

        m_prev = m_sc[...]
        m_new = jnp.maximum(m_prev, jnp.max(mag, axis=-1, keepdims=True))
        corr = jnp.exp(m_prev - m_new)                       # [TQ, 1]
        p = jnp.exp(mag - m_new)                             # unnormalized softmax weights

        m_sc[...] = m_new
        l_sc[...] = corr * l_sc[...] + jnp.sum(p, axis=-1, keepdims=True)

        scale = p * inv_mag
        wr = jnp.where(nonzero, ar * scale, p)               # angle(0) = 0 -> phase = 1 + 0j
        wi = jnp.where(nonzero, ai * scale, 0.0)

        wr = wr.astype(vr_ref.dtype)
        wi = wi.astype(vr_ref.dtype)
        vr = vr_ref[0]                                       # [TK, D]
        vi = vi_ref[0]                                       # [TK, D]

        # Complex PV: 4 narrow matmuls (TK-deep contraction) into f32 accumulators.
        accr_sc[...] = corr * accr_sc[...] + (
            jnp.dot(wr, vr, preferred_element_type=jnp.float32)
            - jnp.dot(wi, vi, preferred_element_type=jnp.float32))
        acci_sc[...] = corr * acci_sc[...] + (
            jnp.dot(wr, vi, preferred_element_type=jnp.float32)
            + jnp.dot(wi, vr, preferred_element_type=jnp.float32))

        @pl.when(kv == pl.num_programs(2) - 1)
        def _finalize():
            inv_l = pl.reciprocal(l_sc[...], approx=approx_recip)   # [TQ, 1]
            o_ref[0] = jnp.concatenate(
                [accr_sc[...] * inv_l, acci_sc[...] * inv_l], axis=-1
            ).astype(o_ref.dtype)

    return kernel


def scaled_dot_product_attention(q: jax.Array, k: jax.Array, v: jax.Array,
                                 temperature: float, *,
                                 compute_dtype=jnp.bfloat16) -> jax.Array:
    """q, k, v: complex64 [B, S, D]. Returns complex64 [B, S, D].

    compute_dtype: dtype of the MXU operands (bf16 fast path / f32 exact path);
    accumulation and all softmax math are always f32.
    """
    B, S, D = q.shape
    assert k.shape == (B, S, D) and v.shape == (B, S, D)

    # The complex64 interface forces planar extraction here; the surrounding model
    # could pass planar tensors directly to avoid these HBM round trips.
    inv_t = 1.0 / float(temperature)
    qr = jnp.real(q).astype(jnp.float32) * inv_t
    qi = jnp.imag(q).astype(jnp.float32) * inv_t
    # Sign rotation lives on the (small, once-read) Q side; K and V are passed once.
    qa = jnp.concatenate([qr, -qi], axis=-1).astype(compute_dtype)                   # (B, S, 2D)
    qb = jnp.concatenate([qi, qr], axis=-1).astype(compute_dtype)                    # (B, S, 2D)
    kp = jnp.concatenate([jnp.real(k), jnp.imag(k)], axis=-1).astype(compute_dtype)  # (B, S, 2D)
    vr = jnp.real(v).astype(compute_dtype)                                           # (B, S, D)
    vi = jnp.imag(v).astype(compute_dtype)                                           # (B, S, D)

    vmem_limit = _vmem_limit_bytes()
    TQ, TK = _choose_tiles(S, vmem_limit)
    grid = (B, S // TQ, S // TK)

    q_spec = pl.BlockSpec((1, TQ, 2 * D), lambda b, i, j: (b, i, 0))   # resident across kv
    k_spec = pl.BlockSpec((1, TK, 2 * D), lambda b, i, j: (b, j, 0))   # streamed along kv
    v_spec = pl.BlockSpec((1, TK, D), lambda b, i, j: (b, j, 0))       # streamed along kv
    o_spec = pl.BlockSpec((1, TQ, 2 * D), lambda b, i, j: (b, i, 0))   # packed [real | imag]

    dsize = jnp.dtype(compute_dtype).itemsize
    n_qtiles = S // TQ
    cost = pl.CostEstimate(
        flops=int(16 * B * S * S * D),                              # two complex matmuls
        transcendentals=int(2 * B * S * S),                         # exp + rsqrt on score tiles
        bytes_accessed=int(B * S * 2 * D * (2 * dsize               # qa + qb (once per q-tile)
                                            + 2 * dsize * n_qtiles  # kp, vr+vi re-read per q-tile
                                            + 4)),                  # f32 packed output
    )

    approx = jnp.dtype(compute_dtype) == jnp.dtype(jnp.bfloat16)
    out_cat = pl.pallas_call(
        _make_kernel(approx_recip=approx),
        out_shape=jax.ShapeDtypeStruct((B, S, 2 * D), jnp.float32),
        grid_spec=pltpu.PrefetchScalarGridSpec(
            num_scalar_prefetch=0,
            grid=grid,
            in_specs=[q_spec, q_spec, k_spec, v_spec, v_spec],
            out_specs=o_spec,
            scratch_shapes=[
                pltpu.VMEM((TQ, 1), jnp.float32),   # running max of |score|
                pltpu.VMEM((TQ, 1), jnp.float32),   # running softmax denominator
                pltpu.VMEM((TQ, D), jnp.float32),   # real accumulator
                pltpu.VMEM((TQ, D), jnp.float32),   # imag accumulator
            ],
        ),
        compiler_params=pltpu.CompilerParams(
            dimension_semantics=("parallel", "parallel", "arbitrary"),
            vmem_limit_bytes=vmem_limit,
        ),
        cost_estimate=cost,
    )(qa, qb, kp, vr, vi)

    out_r = out_cat[..., :D]
    out_i = out_cat[..., D:]
    return (out_r + 1j * out_i).astype(jnp.complex64)


def _reference(q, k, v, temperature):
    attn = jnp.einsum("bsd,btd->bst", q / temperature, k)
    mag = jnp.abs(attn)
    sm = jax.nn.softmax(mag, axis=-1)
    phase = jnp.where(mag > 0, attn / mag.astype(attn.dtype), 1.0 + 0.0j)
    w = sm.astype(attn.dtype) * phase
    return jnp.einsum("bst,btd->bsd", w, v)


if __name__ == "__main__":
    B, S, D = 2, 8, 32
    temperature = math.sqrt(D)

    key = jax.random.PRNGKey(0)
    ks = jax.random.split(key, 6)

    def cplx(k_re, k_im):
        return (jax.random.normal(k_re, (B, S, D), jnp.float32)
                + 1j * jax.random.normal(k_im, (B, S, D), jnp.float32)).astype(jnp.complex64)

    q = cplx(ks[0], ks[1])
    k = cplx(ks[2], ks[3])
    v = cplx(ks[4], ks[5])

    ref = _reference(q, k, v, temperature)

    # Exact-precision path (f32 MXU operands): strict semantic check.
    out_f32 = jax.block_until_ready(
        scaled_dot_product_attention(q, k, v, temperature, compute_dtype=jnp.float32))
    assert out_f32.shape == (B, S, D) and out_f32.dtype == jnp.complex64
    assert jnp.allclose(out_f32, ref, atol=1e-4, rtol=1e-4), "f32 kernel mismatch vs reference"

    # Default fast path (bf16 MXU operands, f32 accumulation): looser tolerance.
    out = jax.block_until_ready(scaled_dot_product_attention(q, k, v, temperature))
    assert out.shape == (B, S, D) and out.dtype == jnp.complex64
    assert jnp.allclose(out, ref, atol=1e-1, rtol=1e-1), "bf16 kernel mismatch vs reference"

    print("KERNEL_OK")
</pallas_src>

<mosaic_0001>
module attributes {stable_mosaic.version = 11 : i64} {
  func.func @kernel(%arg0: i32, %arg1: i32, %arg2: i32, %arg3: memref<1x8x64xf32, #tpu.memory_space<vmem>>, %arg4: memref<1x8x64xf32, #tpu.memory_space<vmem>>, %arg5: memref<1x8x64xf32, #tpu.memory_space<vmem>>, %arg6: memref<1x8x32xf32, #tpu.memory_space<vmem>>, %arg7: memref<1x8x32xf32, #tpu.memory_space<vmem>>, %arg8: memref<1x8x64xf32, #tpu.memory_space<vmem>>, %arg9: memref<8x1xf32, #tpu.memory_space<vmem>>, %arg10: memref<8x1xf32, #tpu.memory_space<vmem>>, %arg11: memref<8x32xf32, #tpu.memory_space<vmem>>, %arg12: memref<8x32xf32, #tpu.memory_space<vmem>>) attributes {dimension_semantics = [#tpu.dimension_semantics<parallel>, #tpu.dimension_semantics<parallel>, #tpu.dimension_semantics<arbitrary>], iteration_bounds = array<i64: 2, 1, 1>, scalar_prefetch = 0 : i64, scratch_operands = 4 : i64, tpu.core_type = #tpu.core_type<tc>, window_params = [{transform_indices = @transform_0, window_bounds = array<i64: 1, 8, 64>}, {transform_indices = @transform_1, window_bounds = array<i64: 1, 8, 64>}, {transform_indices = @transform_2, window_bounds = array<i64: 1, 8, 64>}, {transform_indices = @transform_3, window_bounds = array<i64: 1, 8, 32>}, {transform_indices = @transform_4, window_bounds = array<i64: 1, 8, 32>}, {transform_indices = @transform_5, window_bounds = array<i64: 1, 8, 64>}]} {
    %c0_i32 = arith.constant 0 : i32
    %0 = arith.cmpi eq, %arg2, %c0_i32 : i32
    %1 = arith.extui %0 : i1 to i32
    %c0_i32_0 = arith.constant 0 : i32
    %2 = arith.cmpi ne, %1, %c0_i32_0 : i32
    scf.if %2 {
      %cst_43 = arith.constant 0xFF800000 : f32
      %65 = vector.broadcast %cst_43 : f32 to vector<8x1xf32>
      %c0_44 = arith.constant 0 : index
      %c0_45 = arith.constant 0 : index
      %66 = vector.load %arg9[%c0_44, %c0_45] : memref<8x1xf32, #tpu.memory_space<vmem>>, vector<8x1xf32>
      tpu.vector_store %arg9[%c0_44, %c0_45], %65 {strides = array<i32>} : memref<8x1xf32, #tpu.memory_space<vmem>>, vector<8x1xf32>,
      %cst_46 = arith.constant 0.000000e+00 : f32
      %67 = vector.broadcast %cst_46 : f32 to vector<8x1xf32>
      %c0_47 = arith.constant 0 : index
      %c0_48 = arith.constant 0 : index
      %68 = vector.load %arg10[%c0_47, %c0_48] : memref<8x1xf32, #tpu.memory_space<vmem>>, vector<8x1xf32>
      tpu.vector_store %arg10[%c0_47, %c0_48], %67 {strides = array<i32>} : memref<8x1xf32, #tpu.memory_space<vmem>>, vector<8x1xf32>,
      %cst_49 = arith.constant 0.000000e+00 : f32
      %69 = vector.broadcast %cst_49 : f32 to vector<8x32xf32>
      %c0_50 = arith.constant 0 : index
      %c0_51 = arith.constant 0 : index
      %70 = vector.load %arg11[%c0_50, %c0_51] : memref<8x32xf32, #tpu.memory_space<vmem>>, vector<8x32xf32>
      tpu.vector_store %arg11[%c0_50, %c0_51], %69 {strides = array<i32>} : memref<8x32xf32, #tpu.memory_space<vmem>>, vector<8x32xf32>,
      %cst_52 = arith.constant 0.000000e+00 : f32
      %71 = vector.broadcast %cst_52 : f32 to vector<8x32xf32>
      %c0_53 = arith.constant 0 : index
      %c0_54 = arith.constant 0 : index
      %72 = vector.load %arg12[%c0_53, %c0_54] : memref<8x32xf32, #tpu.memory_space<vmem>>, vector<8x32xf32>
      tpu.vector_store %arg12[%c0_53, %c0_54], %71 {strides = array<i32>} : memref<8x32xf32, #tpu.memory_space<vmem>>, vector<8x32xf32>,
    } else {
    }
    %c0 = arith.constant 0 : index
    %c0_1 = arith.constant 0 : index
    %c0_2 = arith.constant 0 : index
    %3 = vector.load %arg3[%c0, %c0_1, %c0_2] : memref<1x8x64xf32, #tpu.memory_space<vmem>>, vector<1x8x64xf32>
    %4 = vector.shape_cast %3 : vector<1x8x64xf32> to vector<8x64xf32>
    %c0_3 = arith.constant 0 : index
    %c0_4 = arith.constant 0 : index
    %c0_5 = arith.constant 0 : index
    %5 = vector.load %arg4[%c0_3, %c0_4, %c0_5] : memref<1x8x64xf32, #tpu.memory_space<vmem>>, vector<1x8x64xf32>
    %6 = vector.shape_cast %5 : vector<1x8x64xf32> to vector<8x64xf32>
    %c0_6 = arith.constant 0 : index
    %c0_7 = arith.constant 0 : index
    %c0_8 = arith.constant 0 : index
    %7 = vector.load %arg5[%c0_6, %c0_7, %c0_8] : memref<1x8x64xf32, #tpu.memory_space<vmem>>, vector<1x8x64xf32>
    %8 = vector.shape_cast %7 : vector<1x8x64xf32> to vector<8x64xf32>
    %cst = arith.constant dense<0.000000e+00> : vector<8x8xf32>
    %9 = tpu.matmul %4, %8, %cst {dimension_numbers = #tpu.dot_dimension_numbers<[1], [1], [0], [0], [0, 0, 1, 0], [], []>} : vector<8x64xf32>, vector<8x64xf32>, vector<8x8xf32> -> vector<8x8xf32>
    %cst_9 = arith.constant dense<0.000000e+00> : vector<8x8xf32>
    %10 = tpu.matmul %6, %8, %cst_9 {dimension_numbers = #tpu.dot_dimension_numbers<[1], [1], [0], [0], [0, 0, 1, 0], [], []>} : vector<8x64xf32>, vector<8x64xf32>, vector<8x8xf32> -> vector<8x8xf32>
    %11 = arith.mulf %9, %9 : vector<8x8xf32>
    %12 = arith.mulf %10, %10 : vector<8x8xf32>
    %13 = arith.addf %11, %12 : vector<8x8xf32>
    %cst_10 = arith.constant 0.000000e+00 : f32
    %14 = vector.broadcast %cst_10 : f32 to vector<8x8xf32>
    %15 = arith.cmpf ogt, %13, %14 : vector<8x8xf32>
    %cst_11 = arith.constant 1.000000e+00 : f32
    %16 = vector.broadcast %cst_11 : f32 to vector<8x8xf32>
    %17 = arith.select %15, %13, %16 : vector<8x8xi1>, vector<8x8xf32>
    %18 = math.rsqrt %17 : vector<8x8xf32>
    %19 = arith.mulf %13, %18 : vector<8x8xf32>
    %c0_12 = arith.constant 0 : index
    %c0_13 = arith.constant 0 : index
    %20 = vector.load %arg9[%c0_12, %c0_13] : memref<8x1xf32, #tpu.memory_space<vmem>>, vector<8x1xf32>
    %cst_14 = arith.constant dense<0xFF800000> : vector<8xf32>
    %21 = vector.multi_reduction <maximumf>, %19, %cst_14 [1] : vector<8x8xf32> to vector<8xf32>
    %22 = vector.shape_cast %21 : vector<8xf32> to vector<8x1xf32>
    %23 = arith.maximumf %20, %22 : vector<8x1xf32>
    %24 = arith.subf %20, %23 : vector<8x1xf32>
    %25 = math.exp %24 : vector<8x1xf32>
    %26 = vector.broadcast %23 : vector<8x1xf32> to vector<8x8xf32>
    %27 = arith.subf %19, %26 : vector<8x8xf32>
    %28 = math.exp %27 : vector<8x8xf32>
    %c0_15 = arith.constant 0 : index
    %c0_16 = arith.constant 0 : index
    %29 = vector.load %arg9[%c0_15, %c0_16] : memref<8x1xf32, #tpu.memory_space<vmem>>, vector<8x1xf32>
    tpu.vector_store %arg9[%c0_15, %c0_16], %23 {strides = array<i32>} : memref<8x1xf32, #tpu.memory_space<vmem>>, vector<8x1xf32>,
    %c0_17 = arith.constant 0 : index
    %c0_18 = arith.constant 0 : index
    %30 = vector.load %arg10[%c0_17, %c0_18] : memref<8x1xf32, #tpu.memory_space<vmem>>, vector<8x1xf32>
    %31 = arith.mulf %25, %30 : vector<8x1xf32>
    %cst_19 = arith.constant dense<0.000000e+00> : vector<8xf32>
    %32 = vector.multi_reduction <add>, %28, %cst_19 [1] : vector<8x8xf32> to vector<8xf32>
    %33 = vector.shape_cast %32 : vector<8xf32> to vector<8x1xf32>
    %34 = arith.addf %31, %33 : vector<8x1xf32>
    %c0_20 = arith.constant 0 : index
    %c0_21 = arith.constant 0 : index
    %35 = vector.load %arg10[%c0_20, %c0_21] : memref<8x1xf32, #tpu.memory_space<vmem>>, vector<8x1xf32>
    tpu.vector_store %arg10[%c0_20, %c0_21], %34 {strides = array<i32>} : memref<8x1xf32, #tpu.memory_space<vmem>>, vector<8x1xf32>,
    %36 = arith.mulf %28, %18 : vector<8x8xf32>
    %37 = arith.mulf %9, %36 : vector<8x8xf32>
    %38 = arith.select %15, %37, %28 : vector<8x8xi1>, vector<8x8xf32>
    %39 = arith.mulf %10, %36 : vector<8x8xf32>
    %cst_22 = arith.constant 0.000000e+00 : f32
    %40 = vector.broadcast %cst_22 : f32 to vector<8x8xf32>
    %41 = arith.select %15, %39, %40 : vector<8x8xi1>, vector<8x8xf32>
    %c0_23 = arith.constant 0 : index
    %c0_24 = arith.constant 0 : index
    %c0_25 = arith.constant 0 : index
    %42 = vector.load %arg6[%c0_23, %c0_24, %c0_25] : memref<1x8x32xf32, #tpu.memory_space<vmem>>, vector<1x8x32xf32>
    %43 = vector.shape_cast %42 : vector<1x8x32xf32> to vector<8x32xf32>
    %c0_26 = arith.constant 0 : index
    %c0_27 = arith.constant 0 : index
    %c0_28 = arith.constant 0 : index
    %44 = vector.load %arg7[%c0_26, %c0_27, %c0_28] : memref<1x8x32xf32, #tpu.memory_space<vmem>>, vector<1x8x32xf32>
    %45 = vector.shape_cast %44 : vector<1x8x32xf32> to vector<8x32xf32>
    %c0_29 = arith.constant 0 : index
    %c0_30 = arith.constant 0 : index
    %46 = vector.load %arg11[%c0_29, %c0_30] : memref<8x32xf32, #tpu.memory_space<vmem>>, vector<8x32xf32>
    %47 = vector.broadcast %25 : vector<8x1xf32> to vector<8x32xf32>
    %48 = arith.mulf %47, %46 : vector<8x32xf32>
    %cst_31 = arith.constant dense<0.000000e+00> : vector<8x32xf32>
    %49 = tpu.matmul %38, %43, %cst_31 {dimension_numbers = #tpu.dot_dimension_numbers<[1], [0], [0], [1], [0, 0, 1, 1], [], []>} : vector<8x8xf32>, vector<8x32xf32>, vector<8x32xf32> -> vector<8x32xf32>
    %cst_32 = arith.constant dense<0.000000e+00> : vector<8x32xf32>
    %50 = tpu.matmul %41, %45, %cst_32 {dimension_numbers = #tpu.dot_dimension_numbers<[1], [0], [0], [1], [0, 0, 1, 1], [], []>} : vector<8x8xf32>, vector<8x32xf32>, vector<8x32xf32> -> vector<8x32xf32>
    %51 = arith.subf %49, %50 : vector<8x32xf32>
    %52 = arith.addf %48, %51 : vector<8x32xf32>
    %c0_33 = arith.constant 0 : index
    %c0_34 = arith.constant 0 : index
    %53 = vector.load %arg11[%c0_33, %c0_34] : memref<8x32xf32, #tpu.memory_space<vmem>>, vector<8x32xf32>
    tpu.vector_store %arg11[%c0_33, %c0_34], %52 {strides = array<i32>} : memref<8x32xf32, #tpu.memory_space<vmem>>, vector<8x32xf32>,
    %c0_35 = arith.constant 0 : index
    %c0_36 = arith.constant 0 : index
    %54 = vector.load %arg12[%c0_35, %c0_36] : memref<8x32xf32, #tpu.memory_space<vmem>>, vector<8x32xf32>
    %55 = vector.broadcast %25 : vector<8x1xf32> to vector<8x32xf32>
    %56 = arith.mulf %55, %54 : vector<8x32xf32>
    %cst_37 = arith.constant dense<0.000000e+00> : vector<8x32xf32>
    %57 = tpu.matmul %38, %45, %cst_37 {dimension_numbers = #tpu.dot_dimension_numbers<[1], [0], [0], [1], [0, 0, 1, 1], [], []>} : vector<8x8xf32>, vector<8x32xf32>, vector<8x32xf32> -> vector<8x32xf32>
    %cst_38 = arith.constant dense<0.000000e+00> : vector<8x32xf32>
    %58 = tpu.matmul %41, %43, %cst_38 {dimension_numbers = #tpu.dot_dimension_numbers<[1], [0], [0], [1], [0, 0, 1, 1], [], []>} : vector<8x8xf32>, vector<8x32xf32>, vector<8x32xf32> -> vector<8x32xf32>
    %59 = arith.addf %57, %58 : vector<8x32xf32>
    %60 = arith.addf %56, %59 : vector<8x32xf32>
    %c0_39 = arith.constant 0 : index
    %c0_40 = arith.constant 0 : index
    %61 = vector.load %arg12[%c0_39, %c0_40] : memref<8x32xf32, #tpu.memory_space<vmem>>, vector<8x32xf32>
    tpu.vector_store %arg12[%c0_39, %c0_40], %60 {strides = array<i32>} : memref<8x32xf32, #tpu.memory_space<vmem>>, vector<8x32xf32>,
    %c0_i32_41 = arith.constant 0 : i32
    %62 = arith.cmpi eq, %arg2, %c0_i32_41 : i32
    %63 = arith.extui %62 : i1 to i32
    %c0_i32_42 = arith.constant 0 : i32
    %64 = arith.cmpi ne, %63, %c0_i32_42 : i32
    scf.if %64 {
      %c0_43 = arith.constant 0 : index
      %c0_44 = arith.constant 0 : index
      %65 = vector.load %arg10[%c0_43, %c0_44] : memref<8x1xf32, #tpu.memory_space<vmem>>, vector<8x1xf32>
      %66 = tpu.reciprocal %65 : vector<8x1xf32> -> vector<8x1xf32>
      %c0_45 = arith.constant 0 : index
      %c0_46 = arith.constant 0 : index
      %67 = vector.load %arg11[%c0_45, %c0_46] : memref<8x32xf32, #tpu.memory_space<vmem>>, vector<8x32xf32>
      %68 = vector.broadcast %66 : vector<8x1xf32> to vector<8x32xf32>
      %69 = arith.mulf %67, %68 : vector<8x32xf32>
      %c0_47 = arith.constant 0 : index
      %c0_48 = arith.constant 0 : index
      %70 = vector.load %arg12[%c0_47, %c0_48] : memref<8x32xf32, #tpu.memory_space<vmem>>, vector<8x32xf32>
      %71 = vector.broadcast %66 : vector<8x1xf32> to vector<8x32xf32>
      %72 = arith.mulf %70, %71 : vector<8x32xf32>
      %73 = tpu.concatenate %69, %72 in 1 : vector<8x32xf32>, vector<8x32xf32> -> vector<8x64xf32>
      %c0_49 = arith.constant 0 : index
      %c0_50 = arith.constant 0 : index
      %c0_51 = arith.constant 0 : index
      %74 = vector.load %arg8[%c0_49, %c0_50, %c0_51] : memref<1x8x64xf32, #tpu.memory_space<vmem>>, vector<1x8x64xf32>
      %75 = vector.shape_cast %74 : vector<1x8x64xf32> to vector<8x64xf32>
      %76 = vector.shape_cast %73 : vector<8x64xf32> to vector<1x8x64xf32>
      tpu.vector_store %arg8[%c0_49, %c0_50, %c0_51], %76 {strides = array<i32>} : memref<1x8x64xf32, #tpu.memory_space<vmem>>, vector<1x8x64xf32>,
    } else {
    }
    return
  }
  func.func @transform_0(%arg0: i32, %arg1: i32, %arg2: i32) -> (i32, i32, i32) {
    %c0_i32 = arith.constant 0 : i32
    %c0_i32_0 = arith.constant 0 : i32
    return %arg0, %arg1, %c0_i32 : i32, i32, i32
  }
  func.func @transform_1(%arg0: i32, %arg1: i32, %arg2: i32) -> (i32, i32, i32) {
    %c0_i32 = arith.constant 0 : i32
    %c0_i32_0 = arith.constant 0 : i32
    return %arg0, %arg1, %c0_i32 : i32, i32, i32
  }
  func.func @transform_2(%arg0: i32, %arg1: i32, %arg2: i32) -> (i32, i32, i32) {
    %c0_i32 = arith.constant 0 : i32
    %c0_i32_0 = arith.constant 0 : i32
    return %arg0, %arg2, %c0_i32 : i32, i32, i32
  }
  func.func @transform_3(%arg0: i32, %arg1: i32, %arg2: i32) -> (i32, i32, i32) {
    %c0_i32 = arith.constant 0 : i32
    %c0_i32_0 = arith.constant 0 : i32
    return %arg0, %arg2, %c0_i32 : i32, i32, i32
  }
  func.func @transform_4(%arg0: i32, %arg1: i32, %arg2: i32) -> (i32, i32, i32) {
    %c0_i32 = arith.constant 0 : i32
    %c0_i32_0 = arith.constant 0 : i32
    return %arg0, %arg2, %c0_i32 : i32, i32, i32
  }
  func.func @transform_5(%arg0: i32, %arg1: i32, %arg2: i32) -> (i32, i32, i32) {
    %c0_i32 = arith.constant 0 : i32
    %c0_i32_0 = arith.constant 0 : i32
    return %arg0, %arg1, %c0_i32 : i32, i32, i32
  }
}

</mosaic_0001>

<bundles_post_ra>
// kernel: tpu_custom_call.1
= control target key start
LH: loop header
LB: loop body
LE: loop exit
PB: predicated region body
PF: predicated region fallthrough
CT: control target
= control target key end

     0   :  { %s1951_s0 = inlined_call_operand.hbm [shape: f32[2,8,64], index: 0, kind: input, shape index: {}]   ;;  %s1952_s1 = inlined_call_operand.hbm [shape: f32[2,8,64], index: 1, kind: input, shape index: {}]   ;;  %s1953_s2 = inlined_call_operand.hbm [shape: f32[2,8,64], index: 2, kind: input, shape index: {}]   ;;  %s1954_s3 = inlined_call_operand.hbm [shape: f32[2,8,32], index: 3, kind: input, shape index: {}]   ;;  %s1955_s4 = inlined_call_operand.hbm [shape: f32[2,8,32], index: 4, kind: input, shape index: {}]   ;;  %s1956_s5 = inlined_call_operand.hbm [shape: f32[2,8,64], index: 5, kind: output, shape index: {}]  }
   0x1   :  { %1967 = sst [smem:[#allocation24_spill]] %s1952_s1 }
   0x2   :  { %1968 = sst [smem:[#allocation25_spill]] %s1954_s3 }
   0x3   :  { %10 = vsyncpa [#allocation7], 0 }
   0x4   :  { %12 = vsyncpa [#allocation7 + $0x1], 0 }
   0x5   :  { %13 = vsyncpa [#allocation10], 0 }
   0x6   :  { %15 = vsyncpa [#allocation10 + $0x1], 0 }
   0x7   :  { %16 = vsyncpa [#allocation13], 0 }
   0x8   :  { %18 = vsyncpa [#allocation13 + $0x1], 0 }
   0x9   :  { %19 = vsyncpa [#allocation8], 0 }
   0xa   :  { %21 = vsyncpa [#allocation8 + $0x1], 0  ;;  %s1585_s18 = smov 0   ;;  %s1587_s19 = smov 0  }
   0xb   :  { %s1589_s20 = smov 0   ;;  %s1591_s21 = smov 0  }
   0xc   :  { %s1593_s22 = smov 0   ;;  %s1595_s23 = smov 0  }
   0xd LB: > { %1969 = sst [smem:[#allocation20_spill]] %s1538_s22  ;;  %s1616_s24 = sadd.s32 4294967295, %s1542_s23   ;;  %s1542_s23 = sphi %s1595_s23, %s27_s23   ;;  %s1538_s22 = sphi %s1593_s22, %s1998_s22   ;;  %s1534_s21 = sphi %s1591_s21, %s1997_s21   ;;  %s1530_s20 = sphi %s1589_s20, %s2001_s20   ;;  %s1526_s19 = sphi %s1587_s19, %s2000_s19   ;;  %s1522_s18 = sphi %s1585_s18, %s1999_s18  }
   0xe   : > { %1970 = sst [smem:[#allocation21_spill]] %s1542_s23  ;;  %s1131_s25 = sadd.s32 4294967294, %s1542_s23  }
   0xf   : > { %s46_s26 = sadd.s32 1, %s1538_s22  ;;  %s55_s27 = sadd.s32 1, %s1530_s20 }
  0x10   : > { %p48_p0 = scmp.ge.s32.totalorder %s46_s26, 2  ;;  %p62_p1 = scmp.ne.s32.totalorder %s1530_s20, %s1526_s19 }
  0x11   : > { %p63_p2 = scmp.eq.s32.totalorder %s1542_s23, 0  ;;  %p68_p3 = scmp.ne.s32.totalorder %s1526_s19, %s1522_s18 }
  0x12   : > { %s2003_s26 = smov (%p48_p0, %s46_s26), 0  ;;  %p69_p5 = scmp.eq.s32.totalorder %s1616_s24, 0 }
  0x13   : > { %1971 = sst [smem:[#allocation22_spill]] %s2003_s26  ;;  %p1628_p4 = por %p63_p2, %p62_p1 }
  0x14   : > { %s50_s29 = ssub.s32 %s1538_s22, %s2003_s26  ;;  %p206_p6 = scmp.eq.s32.totalorder %s1616_s24, 1 }
  0x15   : > { %p53_p7 = scmp.eq.s32.totalorder %s50_s29, 0  ;;  %p1636_p8 = por %p69_p5, %p68_p3 }
  0x16   : > { %p1640_p9 = por %p206_p6, %p62_p1  ;;  %p212_p10 = scmp.eq.s32.totalorder %s1131_s25, 1 }
  0x17   : > { %s1973_s30 = scalar_select %p1636_p8, 1, 0 }
  0x18   : > { %s1974_s6 = scalar_select %p1640_p9, 1, 0 }
  0x19   : > { %s1645_s7 = scalar_select %p53_p7, %s1530_s20, %s55_s27  }
  0x1a   : > { %p1647_p11 = por %p212_p10, %p68_p3  ;;  %p1237_p13 = scmp.lt.s32.totalorder %s1542_s23, 2 }
  0x1b   : > { %1975 = sst [smem:[#allocation23_spill]] %s1645_s7  ;;  %s1957_s9 = sand.u32 1, %s1530_s20  }
  0x1c   : > { %s1976_s8 = scalar_select %p1647_p11, 1, 0 }
  0x1d   : > { %s1656_s10 = sshll.u32 %s1957_s9, 3  ;;  %s1659_s11 = sshll.u32 %s1538_s22, 7 }
  0x1e   : > { %p1663_p0 = pnand %p1237_p13, %p1628_p4  ;;  %s1959_s13 = sand.u32 1, %s1542_s23  }
  0x1f   : > { %s1978_s1 = sld [smem:[#allocation24_spill]]  ;;  %s255_s17 = scalar_lea.vmem [#allocation9], %s1656_s10 }
  0x20   : > { %s1977_s12 = scalar_select %p1663_p0, 1, 0 }
  0x21   : > { %s263_s25 = sshll.u32 %s255_s17, 4  ;;  %s1681_s27 = scalar_lea.sflag [#allocation10], %s1959_s13  ;;  %s1676_s25 = int_to_ptr.vmem [resolvable:$true] %s263_s25 }
  0x22   : > { %p1687_p4 = pneg %p1663_p0 }
  0x25   : > { %s1672_s16 = scalar_lea.hbm %s1978_s1, %s1659_s11  ;;  %s1307_s17 = scalar_lea.hbm %s1978_s1, 256 }
  0x26   : > { %s1302_s28 = scalar_lea.hbm %s1672_s16, 128  ;;  %p1308_p7 = scmp.lt.u32.totalorder %s1672_s16, %s1978_s1 }
  0x27   : > { %p1303_p3 = scmp.ne.s32.totalorder %s1672_s16, %s1302_s28  ;;  %p1309_p10 = scmp.lt.u32.totalorder %s1307_s17, %s1302_s28 }
  0x28   : > { %p1311_p12 = scmp.lt.u32.totalorder %s1302_s28, %s1672_s16 }
  0x29   : > { %p1305_p5 = pnand %p1687_p4, %p1303_p3  ;;  %p1310_p13 = por %p1309_p10, %p1308_p7 }
  0x2b   : > { %p1306_p6 = pneg %p1305_p5  ;;  %p1312_p1 = por %p1311_p12, %p1310_p13 }
  0x2d   : > { %p1313_p2 = pnand %p1312_p1, %p1306_p6 }
  0x2f   : > { %1316 = shalt.err (!%p1313_p2)
}
  0x30   : > { %s1317_s13 = scalar_lea.vmem %s1676_s25, 128  ;;  %s1544_s14 = smov [#allocation9]  }
  0x31   : > { %p1318_p3 = scmp.ne.s32.totalorder %s1676_s25, %s1317_s13  ;;  %s1322_s15 = sshll.u32 %s1544_s14, 4  ;;  %s1323_s15 = int_to_ptr.vmem [resolvable:$false] %s1322_s15 }
  0x32   : > { %s1324_s26 = scalar_lea.vmem %s1323_s15, 256  ;;  %p1325_p9 = scmp.lt.s32.totalorder %s1676_s25, %s1323_s15 }
  0x33   : > { %p1320_p5 = pnand %p1318_p3, %p1687_p4  ;;  %p1326_p8 = scmp.lt.s32.totalorder %s1324_s26, %s1317_s13 }
  0x35   : > { %p1321_p11 = pneg %p1320_p5  ;;  %p1327_p7 = por %p1326_p8, %p1325_p9 }
  0x37   : > { %p1328_p10 = pnand %p1327_p7, %p1321_p11 }
  0x39   : > { %1331 = shalt.err (!%p1328_p10)
}
  0x3a   : > { %1223 = dma.hbm_to_vmem [thread:$0]  (!%p1663_p0), %s1672_s16, 128, %s1676_s25, %s1681_s27  }
  0x3b   : > { %p1980_p12 = scmp.lt.s32.totalorder %s1542_s23, 3  ;;  %p1981_p1 = scmp.ge.s32.totalorder %s1542_s23, 1 }
  0x3c   : > { %s1983_s3 = sld [smem:[#allocation25_spill]]  ;;  %s293_s14 = scalar_lea.vmem [#allocation12], %s1656_s10 }
  0x3d   : > { %p1715_p2 = pnand %p1981_p1, %p1980_p12  ;;  %s301_s15 = sshll.u32 %s293_s14, 4  ;;  %s302_s15 = int_to_ptr.vmem [resolvable:$true] %s301_s15 }
  0x3e   : > { %s1984_s26 = sand.u32 1, %s1542_s23  }
  0x3f   : > { %s1982_s9 = scalar_select %p1715_p2, 1, 0 }
  0x40   : > { %s1728_s16 = scalar_lea.sflag [#allocation13], %s1984_s26 }
  0x42   : > { %s1723_s17 = scalar_lea.hbm %s1983_s3, %s1659_s11  ;;  %s1337_s13 = scalar_lea.hbm %s1983_s3, 256 }
  0x43   : > { %s1332_s25 = scalar_lea.hbm %s1723_s17, 128  ;;  %p1338_p6 = scmp.lt.u32.totalorder %s1723_s17, %s1983_s3 }
  0x44   : > { %p1333_p8 = scmp.ne.s32.totalorder %s1723_s17, %s1332_s25  ;;  %p1339_p13 = scmp.lt.u32.totalorder %s1337_s13, %s1332_s25 }
  0x45   : > { %p1341_p5 = scmp.lt.u32.totalorder %s1332_s25, %s1723_s17 }
  0x46   : > { %p1335_p9 = pnand %p1333_p8, %p1687_p4  ;;  %p1340_p3 = por %p1339_p13, %p1338_p6 }
  0x48   : > { %p1336_p11 = pneg %p1335_p9  ;;  %p1342_p7 = por %p1341_p5, %p1340_p3 }
  0x4a   : > { %p1343_p10 = pnand %p1342_p7, %p1336_p11 }
  0x4c   : > { %1346 = shalt.err (!%p1343_p10)
}
  0x4d   : > { %s1347_s14 = scalar_lea.vmem %s302_s15, 128  ;;  %s1545_s26 = smov [#allocation12]  }
  0x4e   : > { %p1348_p12 = scmp.ne.s32.totalorder %s302_s15, %s1347_s14  ;;  %s1352_s23 = sshll.u32 %s1545_s26, 4  ;;  %s1353_s23 = int_to_ptr.vmem [resolvable:$false] %s1352_s23 }
  0x4f   : > { %s1354_s1 = scalar_lea.vmem %s1353_s23, 256  ;;  %p1355_p9 = scmp.lt.s32.totalorder %s302_s15, %s1353_s23 }
  0x50   : > { %p1350_p1 = pnand %p1348_p12, %p1687_p4  ;;  %p1356_p2 = scmp.lt.s32.totalorder %s1354_s1, %s1347_s14 }
  0x52   : > { %p1351_p8 = pneg %p1350_p1  ;;  %p1357_p0 = por %p1356_p2, %p1355_p9 }
  0x54   : > { %p1358_p6 = pnand %p1357_p0, %p1351_p8 }
  0x56   : > { %1361 = shalt.err (!%p1358_p6)
}
  0x57   : > { %p1985_p13 = scmp.ne.s32.totalorder %s1977_s12, 0  ;;  %s1752_s25 = scalar_lea.hbm %s1951_s0, %s1659_s11 }
  0x58   : > { %s236_s23 = scalar_lea.vmem [#allocation6], %s1656_s10  ;;  %s1986_s28 = sand.u32 1, %s1530_s20  }
  0x59   : > { %1229 = dma.hbm_to_vmem [thread:$0]  (!%p1985_p13), %s1723_s17, 128, %s302_s15, %s1728_s16  }
  0x5a   : > { %s244_s13 = sshll.u32 %s236_s23, 4  ;;  %s233_s14 = scalar_lea.sflag [#allocation7], %s1986_s28  ;;  %s245_s13 = int_to_ptr.vmem [resolvable:$true] %s244_s13 }
  0x5b   : > { %s1362_s26 = scalar_lea.hbm %s1752_s25, 128  ;;  %s1367_s1 = scalar_lea.hbm %s1951_s0, 256 }
  0x5c   : > { %p1363_p0 = scmp.ne.s32.totalorder %s1752_s25, %s1362_s26  ;;  %p1368_p3 = scmp.lt.u32.totalorder %s1752_s25, %s1951_s0 }
  0x5d   : > { %p1369_p5 = scmp.lt.u32.totalorder %s1367_s1, %s1362_s26  ;;  %p1371_p10 = scmp.lt.u32.totalorder %s1362_s26, %s1752_s25 }
  0x5e   : > { %p1365_p2 = pnand %p1363_p0, %p1687_p4 }
  0x5f   : > { %p1370_p7 = por %p1369_p5, %p1368_p3 }
  0x60   : > { %p1366_p11 = pneg %p1365_p2 }
  0x61   : > { %p1372_p12 = por %p1371_p10, %p1370_p7 }
  0x63   : > { %p1373_p1 = pnand %p1372_p12, %p1366_p11 }
  0x65   : > { %1376 = shalt.err (!%p1373_p1)
}
  0x66   : > { %s1377_s23 = scalar_lea.vmem %s245_s13, 128  ;;  %s1546_s28 = smov [#allocation6]  }
  0x67   : > { %p1378_p8 = scmp.ne.s32.totalorder %s245_s13, %s1377_s23  ;;  %s1382_s3 = sshll.u32 %s1546_s28, 4  ;;  %s1383_s3 = int_to_ptr.vmem [resolvable:$false] %s1382_s3 }
  0x68   : > { %s1384_s17 = scalar_lea.vmem %s1383_s3, 256  ;;  %p1385_p0 = scmp.lt.s32.totalorder %s245_s13, %s1383_s3 }
  0x69   : > { %p1380_p9 = pnand %p1378_p8, %p1687_p4  ;;  %p1386_p2 = scmp.lt.s32.totalorder %s1384_s17, %s1377_s23 }
  0x6b   : > { %p1381_p6 = pneg %p1380_p9  ;;  %p1387_p13 = por %p1386_p2, %p1385_p0 }
  0x6d   : > { %p1388_p3 = pnand %p1387_p13, %p1381_p6 }
  0x6f   : > { %1391 = shalt.err (!%p1388_p3)
}
  0x70   : > { %p1987_p5 = scmp.ne.s32.totalorder %s1977_s12, 0  ;;  %s1778_s1 = scalar_lea.hbm %s1953_s2, %s1659_s11 }
  0x71   : > { %s274_s3 = scalar_lea.vmem [#allocation11], %s1656_s10  ;;  %s1392_s7 = scalar_lea.hbm %s1778_s1, 128 }
  0x72   : > { %1220 = dma.hbm_to_vmem [thread:$0]  (!%p1987_p5), %s1752_s25, 128, %s245_s13, %s233_s14  }
  0x73   : > { %s282_s22 = sshll.u32 %s274_s3, 4  ;;  %p1393_p13 = scmp.ne.s32.totalorder %s1778_s1, %s1392_s7  ;;  %s283_s22 = int_to_ptr.vmem [resolvable:$true] %s282_s22 }
  0x74   : > { %s1397_s25 = scalar_lea.hbm %s1953_s2, 256  ;;  %p1398_p10 = scmp.lt.u32.totalorder %s1778_s1, %s1953_s2 }
  0x75   : > { %p1395_p11 = pnand %p1393_p13, %p1687_p4  ;;  %p1399_p12 = scmp.lt.u32.totalorder %s1397_s25, %s1392_s7 }
  0x76   : > { %p1401_p8 = scmp.lt.u32.totalorder %s1392_s7, %s1778_s1 }
  0x77   : > { %p1396_p7 = pneg %p1395_p11  ;;  %p1400_p1 = por %p1399_p12, %p1398_p10 }
  0x79   : > { %p1402_p9 = por %p1401_p8, %p1400_p1 }
  0x7b   : > { %p1403_p6 = pnand %p1402_p9, %p1396_p7 }
  0x7d   : > { %1406 = shalt.err (!%p1403_p6)
}
  0x7e   : > { %s1407_s17 = scalar_lea.vmem %s283_s22, 128  ;;  %s1547_s26 = smov [#allocation11]  }
  0x7f   : > { %p1408_p0 = scmp.ne.s32.totalorder %s283_s22, %s1407_s17  ;;  %s1412_s15 = sshll.u32 %s1547_s26, 4  ;;  %s1413_s15 = int_to_ptr.vmem [resolvable:$false] %s1412_s15 }
  0x80   : > { %s1414_s3 = scalar_lea.vmem %s1413_s15, 256  ;;  %p1415_p13 = scmp.lt.s32.totalorder %s283_s22, %s1413_s15 }
  0x81   : > { %p1410_p2 = pnand %p1408_p0, %p1687_p4  ;;  %p1416_p11 = scmp.lt.s32.totalorder %s1414_s3, %s1407_s17 }
  0x83   : > { %p1411_p3 = pneg %p1410_p2  ;;  %p1417_p5 = por %p1416_p11, %p1415_p13 }
  0x85   : > { %p1418_p10 = pnand %p1417_p5, %p1411_p3 }
  0x87   : > { %1421 = shalt.err (!%p1418_p10)
}
  0x88   : > { %p1988_p12 = scmp.ne.s32.totalorder %s1977_s12, 0  ;;  %s1803_s28 = scalar_lea.hbm %s1955_s4, %s1659_s11 }
  0x89   : > { %s312_s25 = scalar_lea.vmem [#allocation14], %s1656_s10  ;;  %s1422_s14 = scalar_lea.hbm %s1803_s28, 128 }
  0x8a   : > { %1226 = dma.hbm_to_vmem [thread:$0]  (!%p1988_p12), %s1778_s1, 128, %s283_s22, %s1681_s27  }
  0x8b   : > { %s320_s13 = sshll.u32 %s312_s25, 4  ;;  %p1423_p5 = scmp.ne.s32.totalorder %s1803_s28, %s1422_s14  ;;  %s321_s13 = int_to_ptr.vmem [resolvable:$true] %s320_s13 }
  0x8c   : > { %s1427_s27 = scalar_lea.hbm %s1955_s4, 256  ;;  %p1428_p8 = scmp.lt.u32.totalorder %s1803_s28, %s1955_s4 }
  0x8d   : > { %p1425_p7 = pnand %p1423_p5, %p1687_p4  ;;  %p1429_p9 = scmp.lt.u32.totalorder %s1427_s27, %s1422_s14 }
  0x8e   : > { %p1431_p0 = scmp.lt.u32.totalorder %s1422_s14, %s1803_s28 }
  0x8f   : > { %p1426_p1 = pneg %p1425_p7  ;;  %p1430_p6 = por %p1429_p9, %p1428_p8 }
  0x91   : > { %p1432_p2 = por %p1431_p0, %p1430_p6 }
  0x93   : > { %p1433_p3 = pnand %p1432_p2, %p1426_p1 }
  0x95   : > { %1436 = shalt.err (!%p1433_p3)
}
  0x96   : > { %s1437_s10 = scalar_lea.vmem %s321_s13, 128  ;;  %s1548_s11 = smov [#allocation14]  }
  0x97   : > { %p1438_p13 = scmp.ne.s32.totalorder %s321_s13, %s1437_s10  ;;  %s1442_s15 = sshll.u32 %s1548_s11, 4  ;;  %s1443_s15 = int_to_ptr.vmem [resolvable:$false] %s1442_s15 }
  0x98   : > { %s1444_s3 = scalar_lea.vmem %s1443_s15, 256  ;;  %p1445_p5 = scmp.lt.s32.totalorder %s321_s13, %s1443_s15 }
  0x99   : > { %p1440_p11 = pnand %p1438_p13, %p1687_p4  ;;  %p1446_p7 = scmp.lt.s32.totalorder %s1444_s3, %s1437_s10 }
  0x9b   : > { %p1441_p10 = pneg %p1440_p11  ;;  %p1447_p12 = por %p1446_p7, %p1445_p5 }
  0x9d   : > { %p1448_p8 = pnand %p1447_p12, %p1441_p10 }
  0x9f   : > { %1451 = shalt.err (!%p1448_p8)
}
  0xa0   : > { %p1989_p9 = scmp.ne.s32.totalorder %s1977_s12, 0  ;;  %p1990_p1 = scmp.ne.s32.totalorder %s1982_s9, 0 }
  0xa1   : > { %s1827_s29 = sand.u32 (!%p1990_p1), 1, %s1526_s19   ;;  %p1991_p4 = scmp.ne.s32.totalorder (!%p1990_p1), %s1973_s30, 0 }
  0xa2   : > { %1232 = dma.hbm_to_vmem [thread:$0]  (!%p1989_p9), %s1803_s28, 128, %s321_s13, %s1728_s16  }
  0xa3   : > { %329 = sbr.rel (%p1990_p1) target bundleno = 1126 (0x466), region = 40  ;;  %s1830_s7 = sshll.u32 (!%p1990_p1), %s1827_s29, 3 }
  0xa4   : > { %s332_s23 = scalar_lea.sflag (!%p1990_p1), [#allocation7], %s1827_s29  ;;  %s335_s25 = scalar_lea.vmem (!%p1990_p1), [#allocation6], %s1830_s7 }
  0xaa   : > { %1505 = dma.done.wait (%p1991_p4), %s332_s23, 128  }
  0xab   : > { %1507 = vsyncadd (%p1991_p4), %s332_s23, 4294967168  ;;  %s340_s12 = sand.u32 1, %s1616_s24   ;;  %s344_s16 = scalar_lea.vmem [#allocation9], %s1830_s7 }
  0xac   : > { %s341_s9 = scalar_lea.sflag [#allocation10], %s340_s12 }
  0xad   : > { %1509 = dma.done.wait (%p1991_p4), %s341_s9, 256  }
  0xae   : > { %1511 = vsyncadd (%p1991_p4), %s341_s9, 4294967040  ;;  %s353_s28 = scalar_lea.vmem [#allocation11], %s1830_s7  ;;  %s359_s13 = scalar_lea.sflag [#allocation13], %s340_s12 }
  0xaf   : > { %s362_s14 = scalar_lea.vmem [#allocation12], %s1830_s7 }
  0xb0   : > { %1513 = dma.done.wait (%p1991_p4), %s359_s13, 256  }
  0xb1   : > { %1515 = vsyncadd (%p1991_p4), %s359_s13, 4294967040  ;;  %v1549_v0 = vmov 0.0   ;;  %vm1550_vm0 = vmmov 0   ;;  %vm431_vm1 = vcmask 523264   ;;  %v430_v1 = vld [vmem:[%s353_s28] sm:$0xff]  ;;  %v429_v3 = vld [vmem:[%s344_s16] sm:$0xff] }
  0xb2   : > { %1175 = vmatprep.subr.mxu0 %v1549_v0  ;;  %1180 = vmatprep.subr.mxu1 %v1549_v0  ;;  %v428_v2 = vld [vmem:[%s335_s25] sm:$0xff]  ;;  %vm422_vm2 = vcmask 7168   ;;  %v1551_v4 = vmov -inf   ;;  %vm589_vm4 = vcmask 64512   ;;  %v1552_v16 = vmov 0   ;;  %v619_v21 = vld [vmem:[%s362_s14] sm:$0xff] }
  0xb3   : > { %1177 = vmatprep.mubr.msk.f32.mxu0 %vm1550_vm0, %v1549_v0  ;;  %1182 = vmatprep.mubr.msk.f32.mxu1 %vm1550_vm0, %v1549_v0  ;;  %423 = vst.msk [vmem:[#allocation2] sm:$0xff] %vm422_vm2, %v1551_v4  ;;  %424 = vst.msk [vmem:[#allocation3] sm:$0xff] %vm422_vm2, %v1549_v0  ;;  %s371_s24 = scalar_lea.vmem [#allocation14], %s1830_s7  ;;  %vm425_vm5 = vcmask 261120   ;;  %s1553_s30 = smov 32  }
  0xb4   : > { %1176 = vmatpush3.xpose.msk.msra.mxu0 %vm431_vm1, %v430_v1  ;;  %1181 = vmatpush3.xpose.msk.msra.mxu1 %vm431_vm1, %v430_v1  ;;  %v620_v22 = vld [vmem:[%s371_s24] sm:$0xff]  ;;  %426 = vst.msk [vmem:[#allocation4] sm:$0xff] %vm425_vm5, %v1549_v0  ;;  %427 = vst.msk [vmem:[#allocation5] sm:$0xff] %vm425_vm5, %v1549_v0  ;;  %s1160_s17 = sshll.u32 %s1534_s21, 7  ;;  %s417_s26 = scalar_lea.vmem [#allocation15], %s1830_s7 }
  0xb5   : > { %1185 = vmatprep.subr.mxu0 %v1549_v0  ;;  %1190 = vmatprep.subr.mxu1 %v1549_v0  ;;  %s957_s27 = sshll.u32 %s417_s26, 4  ;;  %s1900_s10 = scalar_lea.hbm %s1956_s5, %s1160_s17  ;;  %s1902_s27 = int_to_ptr.vmem [resolvable:$true] %s957_s27 }
  0xb6   : > { %1292 = vset.pattern.permute.xlu0 %v1552_v16  ;;  %1293 = vset.pattern.permute.xlu1 %v1552_v16  ;;  %s943_s21 = scalar_lea.sflag [#allocation8], %s1827_s29  ;;  %s1452_s11 = scalar_lea.vmem %s1902_s27, 128 }
  0xb7   : > { %1178 = vmatmul.mubr.msk.f32.vlgmr.msra.gmra.mrb[0].mxu0 %vm431_vm1, %v428_v2  ;;  %1183 = vmatmul.mubr.msk.f32.vlgmr.msra.gmra.mrb[0].mxu1 %vm431_vm1, %v429_v3  ;;  %p1453_p12 = scmp.ne.s32.totalorder %s1902_s27, %s1452_s11  ;;  %p1992_p6 = scmp.ne.s32.totalorder %s1974_s6, 0 }
  0xb8   : > { %1187 = vmatprep.mubr.msk.f32.mxu0 %vm1550_vm0, %v1549_v0  ;;  %1192 = vmatprep.mubr.msk.f32.mxu1 %vm1550_vm0, %v1549_v0  ;;  %s1554_s15 = smov [#allocation15]  }
  0xb9   : > { %1186 = vmatpush3.msra.mxu0 %v619_v21  ;;  %1191 = vmatpush3.msra.mxu1 %v620_v22  ;;  %p1454_p0 = pnand %p1453_p12, %p1992_p6  ;;  %s1456_s3 = sshll.u32 %s1554_s15, 4  ;;  %s1457_s3 = int_to_ptr.vmem [resolvable:$false] %s1456_s3 }
  0xba   : > { %v588_v17 = vld [vmem:[#allocation2] sm:$0xff]  ;;  %1195 = vmatprep.subr.mxu0 %v1549_v0  ;;  %1200 = vmatprep.subr.mxu1 %v1549_v0  ;;  %v607_v35 = vld [vmem:[#allocation3] sm:$0xff]  ;;  %s1458_s7 = scalar_lea.vmem %s1457_s3, 256  ;;  %p1459_p3 = scmp.lt.s32.totalorder %s1902_s27, %s1457_s3 }
  0xbb   : > { %v621_v41 = vld [vmem:[#allocation4] sm:$0xff]  ;;  %v778_v49 = vld [vmem:[#allocation5] sm:$0xff]  ;;  %p1455_p2 = pneg %p1454_p0  ;;  %p1460_p13 = scmp.lt.s32.totalorder %s1458_s7, %s1452_s11 }
  0xbd   : > { %p1461_p11 = por %p1460_p13, %p1459_p3 }
  0xbf   : > { %p1462_p10 = pnand %p1461_p11, %p1455_p2 }
 0x18a   : > { %v504_v5 = vpop.f32.mrb[0].mxu0  ;;  %v577_v6 = vpop.f32.mrb[0].mxu1 }
 0x18b   : > { %v581_v7 = vmul.f32 %v504_v5, %v504_v5  ;;  %v582_v8 = vmul.f32 %v577_v6, %v577_v6  ;;  %v1179_v9 = vpop.f32.mrb[1].mxu0  ;;  %v1184_v10 = vpop.f32.mrb[1].mxu1 }
 0x18d   : > { %v583_v11 = vadd.f32 %v582_v8, %v581_v7 }
 0x18f   : > { %vm584_vm3 = vcmp.gt.f32.partialorder %v583_v11, 0.0 }
 0x190   : > { %v585_v12 = vsel %vm584_vm3, %v583_v11, 1.0 }
 0x191   : > { %1294 = vrsqrt.f32 %v585_v12 }
 0x19b   : > { %v1295_v13 = vpop.eup %1294 }
 0x19c   : > { %v587_v14 = vmul.f32 %v1295_v13, %v583_v11 }
 0x19e   : > { %v590_v15 = vsel %vm589_vm4, %v587_v14, -inf }
 0x19f   : > { %591 = vmax.xlane.f32.xlu0 %v590_v15 }
 0x22c   : > { %v592_v18 = vpop.xlane.xlu0 %591 }
 0x22d   : > { %v593_v19 = vmax.f32 %v588_v17, %v592_v18 }
 0x22f   : > { %v594_v20 = vsub.f32 %v588_v17, %v593_v19  ;;  %606 = vst.msk [vmem:[#allocation2] sm:$0xff] %vm422_vm2, %v593_v19  ;;  %599 = vperm.xlu0 %1292, %v593_v19  }
 0x231   : > { %v595_v31 = vmul.f32 1.442695, %v594_v20 }
 0x2ae   : > { %v600_v23 = vpop.permute.xlu0 %599 }
 0x2af   : > { %v602_v24 = vsub.f32 %v587_v14, %v600_v23 }
 0x2b1   : > { %v603_v25 = vmul.f32 1.442695, %v602_v24 }
 0x2b3   : > { %1296 = vpow2.f32 %v603_v25 }
 0x2b4   : > { %1298 = vpow2.f32 %v595_v31 }
 0x2bd   : > { %v1297_v26 = vpop.eup %1296 }
 0x2be   : > { %v609_v27 = vsel %vm589_vm4, %v1297_v26, 0.0  ;;  %v614_v28 = vmul.f32 %v1297_v26, %v1295_v13  ;;  %v1299_v34 = vpop.eup %1298 }
 0x2bf   : > { %610 = vadd.xlane.f32.xlu1 %v609_v27  ;;  %v608_v36 = vmul.f32 %v1299_v34, %v607_v35 }
 0x2c0   : > { %v615_v29 = vmul.f32 %v614_v28, %v504_v5  ;;  %v617_v30 = vmul.f32 %v614_v28, %v577_v6 }
 0x2c2   : > { %v616_v32 = vsel %vm584_vm3, %v615_v29, %v1297_v26  ;;  %v618_v33 = vsel %vm584_vm3, %v617_v30, 0.0 }
 0x2c3   : > { %1188 = vmatmul.mubr.msk.f32.vlgmr.msra.gmra.mrb[2].mxu0 %vm589_vm4, %v616_v32  ;;  %1193 = vmatmul.mubr.msk.f32.vlgmr.msra.gmra.mrb[2].mxu1 %vm589_vm4, %v618_v33 }
 0x2c4   : > { %1196 = vmatpush3.msra.mxu0 %v619_v21  ;;  %1197 = vmatprep.mubr.msk.f32.mxu0 %vm1550_vm0, %v1549_v0 }
 0x2c5   : > { %1201 = vmatpush3.msra.mxu1 %v620_v22  ;;  %1202 = vmatprep.mubr.msk.f32.mxu1 %vm1550_vm0, %v1549_v0 }
 0x2c7   : > { %1198 = vmatmul.mubr.msk.f32.vlgmr.msra.gmra.mrb[4].mxu0 %vm589_vm4, %v618_v33  ;;  %1203 = vmatmul.mubr.msk.f32.vlgmr.msra.gmra.mrb[4].mxu1 %vm589_vm4, %v616_v32 }
 0x2d0   : > { %624 = vperm.xlu1 %1293, %v1299_v34  }
 0x34c   : > { %v611_v37 = vpop.xlane.xlu1 %610 }
 0x34d   : > { %v612_v38 = vadd.f32 %v611_v37, %v608_v36 }
 0x34f   : > { %613 = vst.msk [vmem:[#allocation3] sm:$0xff] %vm422_vm2, %v612_v38 }
 0x350   : > { %v625_v42 = vpop.permute.xlu1 %624 }
 0x351   : > { %v627_v45 = vmul.f32 %v625_v42, %v621_v41  ;;  %v779_v53 = vmul.f32 %v778_v49, %v625_v42 }
 0x356   : > { %v925_v39 = vld [vmem:[#allocation3] sm:$0xff] }
 0x357   : > { %1300 = vrcp.f32 %v925_v39 }
 0x361   : > { %v1301_v40 = vpop.eup %1300 }
 0x362   : > { %930 = vperm.xlu1 %1293, %v1301_v40  }
 0x396   : > { %v697_v43 = vpop.f32.mrb[2].mxu0  ;;  %v770_v44 = vpop.f32.mrb[2].mxu1 }
 0x397   : > { %v774_v46 = vsub.f32 %v697_v43, %v770_v44  ;;  %v1189_v47 = vpop.f32.mrb[3].mxu0  ;;  %v1194_v48 = vpop.f32.mrb[3].mxu1 }
 0x399   : > { %v775_v50 = vadd.f32 %v774_v46, %v627_v45 }
 0x39a   : > { %v846_v51 = vpop.f32.mrb[4].mxu0  ;;  %v916_v52 = vpop.f32.mrb[4].mxu1 }
 0x39b   : > { %777 = vst.msk [vmem:[#allocation4] sm:$0xff] %vm425_vm5, %v775_v50  ;;  %v917_v54 = vadd.f32 %v916_v52, %v846_v51  ;;  %v1199_v55 = vpop.f32.mrb[5].mxu0  ;;  %v1204_v56 = vpop.f32.mrb[5].mxu1 }
 0x39d   : > { %v920_v57 = vadd.f32 %v917_v54, %v779_v53 }
 0x39f   : > { %921 = vst.msk [vmem:[#allocation5] sm:$0xff] %vm425_vm5, %v920_v57 }
 0x3a2   : > { %v927_v61 = vld [vmem:[#allocation4] sm:$0xff] }
 0x3a6   : > { %v934_v58 = vld [vmem:[#allocation5] sm:$0xff] }
 0x3e1   : > { %v931_v59 = vpop.permute.xlu1 %930 }
 0x3e2   : > { %v935_v60 = vmul.f32 %v934_v58, %v931_v59  ;;  %v933_v62 = vmul.f32 %v931_v59, %v927_v61 }
 0x3e4   : > { %937 = vrot.lane.b32.xlu1 %v935_v60, %s1553_s30 }
 0x456   : > { %v938_v63 = vpop.permute.xlu1 %937 }
 0x457   : > { %v940_v0 = vsel %vm425_vm5, %v933_v62, %v938_v63 }
 0x458   : > { %941 = vst.msk [vmem:[%s417_s26] sm:$0xff] %vm431_vm1, %v940_v0 }
 0x459   : > { %1465 = shalt.err (!%p1462_p10)
}
 0x45a   : > { %s1466_s29 = scalar_lea.hbm %s1900_s10, 128  ;;  %s1470_s12 = scalar_lea.hbm %s1956_s5, 256 }
 0x45b   : > { %p1467_p5 = scmp.ne.s32.totalorder %s1900_s10, %s1466_s29  ;;  %p1471_p9 = scmp.lt.u32.totalorder %s1900_s10, %s1956_s5 }
 0x45c   : > { %p1472_p1 = scmp.lt.u32.totalorder %s1470_s12, %s1466_s29  ;;  %p1474_p12 = scmp.lt.u32.totalorder %s1466_s29, %s1900_s10 }
 0x45d   : > { %p1468_p7 = pnand %p1467_p5, %p1992_p6 }
 0x45e   : > { %p1473_p4 = por %p1472_p1, %p1471_p9 }
 0x45f   : > { %p1469_p8 = pneg %p1468_p7 }
 0x460   : > { %p1475_p0 = por %p1474_p12, %p1473_p4 }
 0x462   : > { %p1476_p2 = pnand %p1475_p0, %p1469_p8 }
 0x464   : > { %1479 = shalt.err (!%p1476_p2)
}
 0x465   : > { %1215 = dma.vmem_to_hbm [thread:$0]  (%p1992_p6), %s1902_s27, 128, %s1900_s10, %s943_s21  }
 0x466 PF: > { %s1993_s28 = sld [smem:[#allocation21_spill]]  ;;  %s969_s13 = sand.u32 1, %s1522_s18  }
 0x467   : > { %p1994_p3 = scmp.ne.s32.totalorder %s1976_s8, 0  ;;  %s970_s14 = scalar_lea.sflag [#allocation8], %s969_s13 }
 0x46c   : > { %p1995_p13 = scmp.ge.s32.totalorder %s1993_s28, 2 }
 0x46e   : > { %p1234_p11 = pnand %p1995_p13, %p1994_p3 }
 0x470   : > { %1517 = dma.done.wait (!%p1234_p11), %s970_s14, 128  }
 0x471   : > { %1519 = vsyncadd (!%p1234_p11), %s970_s14, 4294967168  ;;  %s27_s23 = sadd.s32 1, %s1993_s28   ;;  %s1996_s6 = sld [smem:[#allocation23_spill]] }
 0x472   : > { %p24_p10 = scmp.ge.s32.totalorder %s27_s23, 4   ;;  %s1997_s21 = sld [smem:[#allocation20_spill]] }
 0x473   : > { %s1998_s22 = sld [smem:[#allocation22_spill]]  ;;  %s1999_s18 = smov %s1526_s19 }
 0x474   : > { %s2000_s19 = smov %s1530_s20  ;;  %26 = sbr.rel (!%p24_p10) target bundleno = 13 (0xd), region = 141 }
 0x477   : > { %s2001_s20 = smov %s1996_s6 }
 0x47b   :  { %975 = vsyncpa [#allocation7], 1 }
 0x47c   :  { %977 = vsyncpa [#allocation7 + $0x1], 1 }
 0x47d   :  { %978 = vsyncpa [#allocation10], 1 }
 0x47e   :  { %980 = vsyncpa [#allocation10 + $0x1], 1 }
 0x47f   :  { %981 = vsyncpa [#allocation13], 1 }
 0x480   :  { %983 = vsyncpa [#allocation13 + $0x1], 1 }
 0x481   :  { %984 = vsyncpa [#allocation8], 1 }
 0x482   :  { %986 = vsyncpa [#allocation8 + $0x1], 1 }

</bundles_post_ra>
